<compile_context>
chip_gen: v7x
topology: tpu7x:2x2x1
jax: 0.10.0
libtpu: 0.0.40
codegen_flags: <defaults>
</compile_context>

<pallas_src>
import functools

import jax
import jax.numpy as jnp
from jax.experimental import pallas as pl
from jax.experimental.pallas import tpu as pltpu

LOG_2PI = 1.8378770664093453  # np.log(2 * np.pi)


def _mdn_loss_kernel(h_ref, tg_ref, w_ref, b_ref, loss_ref, *, n_mix, eps):
    """One row-tile of timesteps: y = W @ h_tile, then lane-dense MDN loss."""
    M = n_mix

    w = w_ref[...]                                     # (P, D)
    h = h_ref[...]                                     # (D, TN)
    b = b_ref[...].astype(jnp.float32)                 # (P, 1)

    # MXU matmul with f32 accumulation; bias broadcasts over the lane (N) axis.
    y = jnp.dot(w, h, preferred_element_type=jnp.float32) + b   # (P, TN) f32

    tg = tg_ref[...].astype(jnp.float32)               # (3, TN)
    tg_x = tg[0:1, :]
    tg_y = tg[1:2, :]
    tg_pen = tg[2:3, :]

    # bias argument of compute_parameters() is zero in forward().
    logits = y[0:M, :]                                 # (M, TN)
    mean_x = y[M:2 * M, :]
    mean_y = y[2 * M:3 * M, :]
    std_x = jnp.exp(y[3 * M:4 * M, :]) + eps
    std_y = jnp.exp(y[4 * M:5 * M, :]) + eps
    rho = jnp.tanh(y[5 * M:6 * M, :]) * (1.0 / (1.0 + eps))
    bern = jax.nn.sigmoid(y[6 * M:6 * M + 1, :])       # (1, TN)
    bern = (bern + eps) * (1.0 / (1.0 + 2.0 * eps))

    # log-softmax over the M mixture rows (unrolled max/add over sublane rows -> VPU only).
    lmax = logits[0:1, :]
    for m in range(1, M):
        lmax = jnp.maximum(lmax, logits[m:m + 1, :])
    e = jnp.exp(logits - lmax)
    esum = e[0:1, :]
    for m in range(1, M):
        esum = esum + e[m:m + 1, :]
    log_pi = logits - lmax - jnp.log(esum)             # (M, TN)

    tg_x_s = (tg_x - mean_x) / std_x
    tg_y_s = (tg_y - mean_y) / std_y
    z = tg_x_s * tg_x_s + tg_y_s * tg_y_s - 2.0 * rho * tg_x_s * tg_y_s
    tmp = 1.0 - rho * rho

    # Fused: -log(std_x) - log(std_y) - 0.5*log(tmp) == -log(std_x * std_y * sqrt(tmp))
    mpl = (-z / (2.0 * tmp)
           - LOG_2PI
           - jnp.log(std_x * std_y * jnp.sqrt(tmp))
           + log_pi)                                    # (M, TN)

    # logsumexp over mixture rows (unrolled).
    mmax = mpl[0:1, :]
    for m in range(1, M):
        mmax = jnp.maximum(mmax, mpl[m:m + 1, :])
    p = jnp.exp(mpl - mmax)
    psum = p[0:1, :]
    for m in range(1, M):
        psum = psum + p[m:m + 1, :]
    mll = jnp.log(psum) + mmax                          # (1, TN)

    loss = (-mll
            - tg_pen * jnp.log(bern)
            - (1.0 - tg_pen) * jnp.log(1.0 - bern))     # (1, TN)

    loss_ref[...] = loss                                # lane-dense full-width store


def mdn_loss(h_seq, tg_seq, W, b, n_mix, eps=1e-6, tile_n=2048,
             matmul_dtype=jnp.float32):
    """Pallas implementation of mdn.forward(h_seq, tg_seq).

    `matmul_dtype=jnp.bfloat16` halves HBM traffic for the dominant h stream on real
    sizes (f32 accumulation is kept); the demo uses f32 to match PyTorch exactly.
    """
    batch = h_seq.shape[0]
    D = h_seq.shape[-1]
    P = 6 * n_mix + 1
    assert W.shape == (P, D), (W.shape, (P, D))

    h = h_seq.reshape(-1, D)
    tg = tg_seq.reshape(-1, tg_seq.shape[-1])
    N = h.shape[0]

    # Lane-dense layout: N on the last (128-lane) axis.
    h_t = h.T.astype(matmul_dtype)            # (D, N)
    tg_t = tg.T.astype(jnp.float32)           # (3, N)
    w = W.astype(matmul_dtype)                # (P, D), native PyTorch layout
    bb = b.reshape(P, 1).astype(jnp.float32)  # (P, 1)

    # Tile size: multiple of 128, sized so the double-buffered h tiles stay well
    # inside the default scoped VMEM on every generation (incl. v7x's 64 MiB VMEM).
    itemsize = jnp.dtype(matmul_dtype).itemsize
    vmem_budget_for_h = 8 * 1024 * 1024                 # bytes for 2 x h tile
    max_tn = max(128, (vmem_budget_for_h // (2 * D * itemsize)) // 128 * 128)
    tn = max(128, min(tile_n, max_tn, pl.cdiv(N, 128) * 128))
    n_pad = pl.cdiv(N, tn) * tn
    if n_pad != N:
        h_t = jnp.pad(h_t, ((0, 0), (0, n_pad - N)))
        tg_t = jnp.pad(tg_t, ((0, 0), (0, n_pad - N)))
    num_tiles = n_pad // tn

    kernel = functools.partial(_mdn_loss_kernel, n_mix=n_mix, eps=eps)

    cost = pl.CostEstimate(
        flops=2 * N * D * P + 40 * N * n_mix,
        transcendentals=N * (5 * n_mix + 6),
        bytes_accessed=int(h_t.size * itemsize + tg_t.size * 4
                           + w.size * itemsize + bb.size * 4 + n_pad * 4),
    )

    per_t = pl.pallas_call(
        kernel,
        out_shape=jax.ShapeDtypeStruct((1, n_pad), jnp.float32),
        grid=(num_tiles,),
        in_specs=[
            pl.BlockSpec((D, tn), lambda i: (0, i)),     # h tile (pipelined)
            pl.BlockSpec((3, tn), lambda i: (0, i)),     # target tile (pipelined)
            pl.BlockSpec((P, D), lambda i: (0, 0)),      # W, resident
            pl.BlockSpec((P, 1), lambda i: (0, 0)),      # bias, resident
        ],
        out_specs=pl.BlockSpec((1, tn), lambda i: (0, i)),
        compiler_params=pltpu.CompilerParams(
            dimension_semantics=("parallel",),           # shard tiles across TCs (v7x)
            vmem_limit_bytes=32 * 1024 * 1024,
        ),
        cost_estimate=cost,
    )(h_t, tg_t, w, bb)

    # Tiny final reduction in XLA; padded columns are sliced off (no masking needed).
    return jnp.sum(per_t[0, :N]) / batch


def _reference_loss(h_seq, tg_seq, W, b, n_mix, eps=1e-6):
    """Plain-JAX reference (mirrors the PyTorch forward)."""
    M = n_mix
    batch = h_seq.shape[0]
    h = h_seq.reshape(-1, h_seq.shape[-1]).astype(jnp.float32)
    tg = tg_seq.reshape(-1, tg_seq.shape[-1]).astype(jnp.float32)
    y = h @ W.T.astype(jnp.float32) + b.astype(jnp.float32)
    pi = jax.nn.softmax(y[:, :M], axis=1)
    mean_x = y[:, M:2 * M]
    mean_y = y[:, 2 * M:3 * M]
    std_x = jnp.exp(y[:, 3 * M:4 * M]) + eps
    std_y = jnp.exp(y[:, 4 * M:5 * M]) + eps
    rho = jnp.tanh(y[:, 5 * M:6 * M]) / (1.0 + eps)
    bern = (jax.nn.sigmoid(y[:, -1]) + eps) / (1.0 + 2.0 * eps)
    tg_x, tg_y, tg_pen = tg[:, 0:1], tg[:, 1:2], tg[:, 2]
    tg_x_s = (tg_x - mean_x) / std_x
    tg_y_s = (tg_y - mean_y) / std_y
    z = tg_x_s ** 2 + tg_y_s ** 2 - 2.0 * rho * tg_x_s * tg_y_s
    tmp = 1.0 - rho ** 2
    mpl = (-z / (2.0 * tmp) - LOG_2PI - jnp.log(std_x) - jnp.log(std_y)
           - 0.5 * jnp.log(tmp) + jnp.log(pi))
    mpl_max = jnp.max(mpl, axis=1, keepdims=True)
    mll = jnp.log(jnp.sum(jnp.exp(mpl - mpl_max), axis=1)) + mpl_max[:, 0]
    lpt = -mll - tg_pen * jnp.log(bern) - (1.0 - tg_pen) * jnp.log(1.0 - bern)
    return jnp.sum(lpt) / batch


if __name__ == "__main__":
    # Small shapes consistent with the module's forward.
    batch, seq, n_inputs, n_mix = 2, 8, 32, 4
    out_dim = n_mix * 6 + 1

    key = jax.random.PRNGKey(0)
    k_h, k_tg, k_pen, k_w, k_b = jax.random.split(key, 5)

    h_seq = jax.random.normal(k_h, (batch, seq, n_inputs), dtype=jnp.float32)
    tg_xy = jax.random.normal(k_tg, (batch, seq, 2), dtype=jnp.float32)
    tg_pen = jax.random.bernoulli(k_pen, 0.2, (batch, seq, 1)).astype(jnp.float32)
    tg_seq = jnp.concatenate([tg_xy, tg_pen], axis=-1)              # (batch, seq, 3)

    # Deterministic synthetic Linear(n_inputs -> 6M+1) parameters (PyTorch layout).
    W = 0.1 * jax.random.normal(k_w, (out_dim, n_inputs), dtype=jnp.float32)
    b = 0.1 * jax.random.normal(k_b, (out_dim,), dtype=jnp.float32)

    # TODO(synk): mdn.predict() (multinomial sampling path) and the backward-only
    # register_hook gradient clamp are not part of forward() and are not implemented.
    loss = mdn_loss(h_seq, tg_seq, W, b, n_mix)
    loss = jax.block_until_ready(loss)

    ref = jax.block_until_ready(_reference_loss(h_seq, tg_seq, W, b, n_mix))
    assert jnp.isfinite(loss), "loss is not finite"
    assert jnp.allclose(loss, ref, rtol=1e-4, atol=1e-4), (loss, ref)

    print("KERNEL_OK")
</pallas_src>

<mosaic_0001>
module attributes {stable_mosaic.version = 11 : i64} {
  func.func @_mdn_loss_kernel(%arg0: i32, %arg1: memref<32x128xf32, #tpu.memory_space<vmem>>, %arg2: memref<3x128xf32, #tpu.memory_space<vmem>>, %arg3: memref<25x32xf32, #tpu.memory_space<vmem>>, %arg4: memref<25x1xf32, #tpu.memory_space<vmem>>, %arg5: memref<1x128xf32, #tpu.memory_space<vmem>>) attributes {dimension_semantics = [#tpu.dimension_semantics<parallel>], iteration_bounds = array<i64: 1>, scalar_prefetch = 0 : i64, scratch_operands = 0 : i64, tpu.core_type = #tpu.core_type<tc>, window_params = [{transform_indices = @transform_0, window_bounds = array<i64: 32, 128>}, {transform_indices = @transform_1, window_bounds = array<i64: 3, 128>}, {pipeline_mode = #tpu.pipeline_mode<synchronous>, transform_indices = @transform_2, window_bounds = array<i64: 25, 32>}, {pipeline_mode = #tpu.pipeline_mode<synchronous>, transform_indices = @transform_3, window_bounds = array<i64: 25, 1>}, {transform_indices = @transform_4, window_bounds = array<i64: 1, 128>}]} {
    %c0 = arith.constant 0 : index
    %c0_0 = arith.constant 0 : index
    %0 = vector.load %arg3[%c0, %c0_0] : memref<25x32xf32, #tpu.memory_space<vmem>>, vector<25x32xf32>
    %c0_1 = arith.constant 0 : index
    %c0_2 = arith.constant 0 : index
    %1 = vector.load %arg1[%c0_1, %c0_2] : memref<32x128xf32, #tpu.memory_space<vmem>>, vector<32x128xf32>
    %c0_3 = arith.constant 0 : index
    %c0_4 = arith.constant 0 : index
    %2 = vector.load %arg4[%c0_3, %c0_4] : memref<25x1xf32, #tpu.memory_space<vmem>>, vector<25x1xf32>
    %cst = arith.constant dense<0.000000e+00> : vector<25x128xf32>
    %3 = tpu.matmul %0, %1, %cst {dimension_numbers = #tpu.dot_dimension_numbers<[1], [0], [0], [1], [0, 0, 1, 1], [], []>} : vector<25x32xf32>, vector<32x128xf32>, vector<25x128xf32> -> vector<25x128xf32>
    %4 = vector.broadcast %2 : vector<25x1xf32> to vector<25x128xf32>
    %5 = arith.addf %3, %4 : vector<25x128xf32>
    %c0_5 = arith.constant 0 : index
    %c0_6 = arith.constant 0 : index
    %6 = vector.load %arg2[%c0_5, %c0_6] : memref<3x128xf32, #tpu.memory_space<vmem>>, vector<3x128xf32>
    %7 = vector.extract_strided_slice %6 {offsets = [0, 0], sizes = [1, 128], strides = [1, 1]} : vector<3x128xf32> to vector<1x128xf32>
    %8 = vector.extract_strided_slice %6 {offsets = [1, 0], sizes = [1, 128], strides = [1, 1]} : vector<3x128xf32> to vector<1x128xf32>
    %9 = vector.extract_strided_slice %6 {offsets = [2, 0], sizes = [1, 128], strides = [1, 1]} : vector<3x128xf32> to vector<1x128xf32>
    %10 = vector.extract_strided_slice %5 {offsets = [0, 0], sizes = [4, 128], strides = [1, 1]} : vector<25x128xf32> to vector<4x128xf32>
    %11 = vector.extract_strided_slice %5 {offsets = [4, 0], sizes = [4, 128], strides = [1, 1]} : vector<25x128xf32> to vector<4x128xf32>
    %12 = vector.extract_strided_slice %5 {offsets = [8, 0], sizes = [4, 128], strides = [1, 1]} : vector<25x128xf32> to vector<4x128xf32>
    %13 = vector.extract_strided_slice %5 {offsets = [12, 0], sizes = [4, 128], strides = [1, 1]} : vector<25x128xf32> to vector<4x128xf32>
    %14 = math.exp %13 : vector<4x128xf32>
    %cst_7 = arith.constant 9.99999997E-7 : f32
    %15 = vector.broadcast %cst_7 : f32 to vector<4x128xf32>
    %16 = arith.addf %14, %15 : vector<4x128xf32>
    %17 = vector.extract_strided_slice %5 {offsets = [16, 0], sizes = [4, 128], strides = [1, 1]} : vector<25x128xf32> to vector<4x128xf32>
    %18 = math.exp %17 : vector<4x128xf32>
    %cst_8 = arith.constant 9.99999997E-7 : f32
    %19 = vector.broadcast %cst_8 : f32 to vector<4x128xf32>
    %20 = arith.addf %18, %19 : vector<4x128xf32>
    %21 = vector.extract_strided_slice %5 {offsets = [20, 0], sizes = [4, 128], strides = [1, 1]} : vector<25x128xf32> to vector<4x128xf32>
    %22 = math.tanh %21 : vector<4x128xf32>
    %cst_9 = arith.constant 0.999998986 : f32
    %23 = vector.broadcast %cst_9 : f32 to vector<4x128xf32>
    %24 = arith.mulf %22, %23 : vector<4x128xf32>
    %25 = vector.extract_strided_slice %5 {offsets = [24, 0], sizes = [1, 128], strides = [1, 1]} : vector<25x128xf32> to vector<1x128xf32>
    %26 = arith.negf %25 : vector<1x128xf32>
    %27 = math.exp %26 : vector<1x128xf32>
    %cst_10 = arith.constant 1.000000e+00 : f32
    %28 = vector.broadcast %cst_10 : f32 to vector<1x128xf32>
    %29 = arith.addf %28, %27 : vector<1x128xf32>
    %30 = arith.divf %28, %29 : vector<1x128xf32>
    %cst_11 = arith.constant 9.99999997E-7 : f32
    %31 = vector.broadcast %cst_11 : f32 to vector<1x128xf32>
    %32 = arith.addf %30, %31 : vector<1x128xf32>
    %cst_12 = arith.constant 0.999997973 : f32
    %33 = vector.broadcast %cst_12 : f32 to vector<1x128xf32>
    %34 = arith.mulf %32, %33 : vector<1x128xf32>
    %35 = vector.extract_strided_slice %10 {offsets = [0, 0], sizes = [1, 128], strides = [1, 1]} : vector<4x128xf32> to vector<1x128xf32>
    %36 = vector.extract_strided_slice %10 {offsets = [1, 0], sizes = [1, 128], strides = [1, 1]} : vector<4x128xf32> to vector<1x128xf32>
    %37 = arith.maximumf %35, %36 : vector<1x128xf32>
    %38 = vector.extract_strided_slice %10 {offsets = [2, 0], sizes = [1, 128], strides = [1, 1]} : vector<4x128xf32> to vector<1x128xf32>
    %39 = arith.maximumf %37, %38 : vector<1x128xf32>
    %40 = vector.extract_strided_slice %10 {offsets = [3, 0], sizes = [1, 128], strides = [1, 1]} : vector<4x128xf32> to vector<1x128xf32>
    %41 = arith.maximumf %39, %40 : vector<1x128xf32>
    %42 = vector.broadcast %41 : vector<1x128xf32> to vector<4x128xf32>
    %43 = arith.subf %10, %42 : vector<4x128xf32>
    %44 = math.exp %43 : vector<4x128xf32>
    %45 = vector.extract_strided_slice %44 {offsets = [0, 0], sizes = [1, 128], strides = [1, 1]} : vector<4x128xf32> to vector<1x128xf32>
    %46 = vector.extract_strided_slice %44 {offsets = [1, 0], sizes = [1, 128], strides = [1, 1]} : vector<4x128xf32> to vector<1x128xf32>
    %47 = arith.addf %45, %46 : vector<1x128xf32>
    %48 = vector.extract_strided_slice %44 {offsets = [2, 0], sizes = [1, 128], strides = [1, 1]} : vector<4x128xf32> to vector<1x128xf32>
    %49 = arith.addf %47, %48 : vector<1x128xf32>
    %50 = vector.extract_strided_slice %44 {offsets = [3, 0], sizes = [1, 128], strides = [1, 1]} : vector<4x128xf32> to vector<1x128xf32>
    %51 = arith.addf %49, %50 : vector<1x128xf32>
    %52 = vector.broadcast %41 : vector<1x128xf32> to vector<4x128xf32>
    %53 = arith.subf %10, %52 : vector<4x128xf32>
    %54 = math.log %51 : vector<1x128xf32>
    %55 = vector.broadcast %54 : vector<1x128xf32> to vector<4x128xf32>
    %56 = arith.subf %53, %55 : vector<4x128xf32>
    %57 = vector.broadcast %7 : vector<1x128xf32> to vector<4x128xf32>
    %58 = arith.subf %57, %11 : vector<4x128xf32>
    %59 = arith.divf %58, %16 : vector<4x128xf32>
    %60 = vector.broadcast %8 : vector<1x128xf32> to vector<4x128xf32>
    %61 = arith.subf %60, %12 : vector<4x128xf32>
    %62 = arith.divf %61, %20 : vector<4x128xf32>
    %63 = arith.mulf %59, %59 : vector<4x128xf32>
    %64 = arith.mulf %62, %62 : vector<4x128xf32>
    %65 = arith.addf %63, %64 : vector<4x128xf32>
    %cst_13 = arith.constant 2.000000e+00 : f32
    %66 = vector.broadcast %cst_13 : f32 to vector<4x128xf32>
    %67 = arith.mulf %66, %24 : vector<4x128xf32>
    %68 = arith.mulf %67, %59 : vector<4x128xf32>
    %69 = arith.mulf %68, %62 : vector<4x128xf32>
    %70 = arith.subf %65, %69 : vector<4x128xf32>
    %71 = arith.mulf %24, %24 : vector<4x128xf32>
    %cst_14 = arith.constant 1.000000e+00 : f32
    %72 = vector.broadcast %cst_14 : f32 to vector<4x128xf32>
    %73 = arith.subf %72, %71 : vector<4x128xf32>
    %cst_15 = arith.constant 0.000000e+00 : f32
    %74 = vector.broadcast %cst_15 : f32 to vector<4x128xf32>
    %75 = arith.subf %74, %70 : vector<4x128xf32>
    %cst_16 = arith.constant 2.000000e+00 : f32
    %76 = vector.broadcast %cst_16 : f32 to vector<4x128xf32>
    %77 = arith.mulf %76, %73 : vector<4x128xf32>
    %78 = arith.divf %75, %77 : vector<4x128xf32>
    %cst_17 = arith.constant 1.83787704 : f32
    %79 = vector.broadcast %cst_17 : f32 to vector<4x128xf32>
    %80 = arith.subf %78, %79 : vector<4x128xf32>
    %81 = arith.mulf %16, %20 : vector<4x128xf32>
    %82 = math.sqrt %73 : vector<4x128xf32>
    %83 = arith.mulf %81, %82 : vector<4x128xf32>
    %84 = math.log %83 : vector<4x128xf32>
    %85 = arith.subf %80, %84 : vector<4x128xf32>
    %86 = arith.addf %85, %56 : vector<4x128xf32>
    %87 = vector.extract_strided_slice %86 {offsets = [0, 0], sizes = [1, 128], strides = [1, 1]} : vector<4x128xf32> to vector<1x128xf32>
    %88 = vector.extract_strided_slice %86 {offsets = [1, 0], sizes = [1, 128], strides = [1, 1]} : vector<4x128xf32> to vector<1x128xf32>
    %89 = arith.maximumf %87, %88 : vector<1x128xf32>
    %90 = vector.extract_strided_slice %86 {offsets = [2, 0], sizes = [1, 128], strides = [1, 1]} : vector<4x128xf32> to vector<1x128xf32>
    %91 = arith.maximumf %89, %90 : vector<1x128xf32>
    %92 = vector.extract_strided_slice %86 {offsets = [3, 0], sizes = [1, 128], strides = [1, 1]} : vector<4x128xf32> to vector<1x128xf32>
    %93 = arith.maximumf %91, %92 : vector<1x128xf32>
    %94 = vector.broadcast %93 : vector<1x128xf32> to vector<4x128xf32>
    %95 = arith.subf %86, %94 : vector<4x128xf32>
    %96 = math.exp %95 : vector<4x128xf32>
    %97 = vector.extract_strided_slice %96 {offsets = [0, 0], sizes = [1, 128], strides = [1, 1]} : vector<4x128xf32> to vector<1x128xf32>
    %98 = vector.extract_strided_slice %96 {offsets = [1, 0], sizes = [1, 128], strides = [1, 1]} : vector<4x128xf32> to vector<1x128xf32>
    %99 = arith.addf %97, %98 : vector<1x128xf32>
    %100 = vector.extract_strided_slice %96 {offsets = [2, 0], sizes = [1, 128], strides = [1, 1]} : vector<4x128xf32> to vector<1x128xf32>
    %101 = arith.addf %99, %100 : vector<1x128xf32>
    %102 = vector.extract_strided_slice %96 {offsets = [3, 0], sizes = [1, 128], strides = [1, 1]} : vector<4x128xf32> to vector<1x128xf32>
    %103 = arith.addf %101, %102 : vector<1x128xf32>
    %104 = math.log %103 : vector<1x128xf32>
    %105 = arith.addf %104, %93 : vector<1x128xf32>
    %cst_18 = arith.constant 0.000000e+00 : f32
    %106 = vector.broadcast %cst_18 : f32 to vector<1x128xf32>
    %107 = arith.subf %106, %105 : vector<1x128xf32>
    %108 = math.log %34 : vector<1x128xf32>
    %109 = arith.mulf %9, %108 : vector<1x128xf32>
    %110 = arith.subf %107, %109 : vector<1x128xf32>
    %cst_19 = arith.constant 1.000000e+00 : f32
    %111 = vector.broadcast %cst_19 : f32 to vector<1x128xf32>
    %112 = arith.subf %111, %9 : vector<1x128xf32>
    %cst_20 = arith.constant 1.000000e+00 : f32
    %113 = vector.broadcast %cst_20 : f32 to vector<1x128xf32>
    %114 = arith.subf %113, %34 : vector<1x128xf32>
    %115 = math.log %114 : vector<1x128xf32>
    %116 = arith.mulf %112, %115 : vector<1x128xf32>
    %117 = arith.subf %110, %116 : vector<1x128xf32>
    %c0_21 = arith.constant 0 : index
    %c0_22 = arith.constant 0 : index
    %118 = vector.load %arg5[%c0_21, %c0_22] : memref<1x128xf32, #tpu.memory_space<vmem>>, vector<1x128xf32>
    tpu.vector_store %arg5[%c0_21, %c0_22], %117 {strides = array<i32>} : memref<1x128xf32, #tpu.memory_space<vmem>>, vector<1x128xf32>,
    return
  }
  func.func @transform_0(%arg0: i32) -> (i32, i32) {
    %c0_i32 = arith.constant 0 : i32
    %c0_i32_0 = arith.constant 0 : i32
    return %c0_i32, %arg0 : i32, i32
  }
  func.func @transform_1(%arg0: i32) -> (i32, i32) {
    %c0_i32 = arith.constant 0 : i32
    %c0_i32_0 = arith.constant 0 : i32
    return %c0_i32, %arg0 : i32, i32
  }
  func.func @transform_2(%arg0: i32) -> (i32, i32) {
    %c0_i32 = arith.constant 0 : i32
    %c0_i32_0 = arith.constant 0 : i32
    %c0_i32_1 = arith.constant 0 : i32
    return %c0_i32, %c0_i32_0 : i32, i32
  }
  func.func @transform_3(%arg0: i32) -> (i32, i32) {
    %c0_i32 = arith.constant 0 : i32
    %c0_i32_0 = arith.constant 0 : i32
    %c0_i32_1 = arith.constant 0 : i32
    return %c0_i32, %c0_i32_0 : i32, i32
  }
  func.func @transform_4(%arg0: i32) -> (i32, i32) {
    %c0_i32 = arith.constant 0 : i32
    %c0_i32_0 = arith.constant 0 : i32
    return %c0_i32, %arg0 : i32, i32
  }
}

</mosaic_0001>

<bundles_post_ra>
// kernel: tpu_custom_call.1
= control target key start
LH: loop header
LB: loop body
LE: loop exit
PB: predicated region body
PF: predicated region fallthrough
CT: control target
= control target key end

     0   :  { %9 = vsyncpa [#allocation3], 0  ;;  %s567_s0 = inlined_call_operand.vmem [shape: f32[32,128], index: 0, kind: input, shape index: {}]   ;;  %s568_s1 = inlined_call_operand.vmem [shape: f32[3,128], index: 1, kind: input, shape index: {}]   ;;  %s569_s2 = inlined_call_operand.hbm [shape: f32[25,32], index: 2, kind: input, shape index: {}]   ;;  %s570_s3 = inlined_call_operand.vmem [shape: f32[25,1], index: 3, kind: input, shape index: {}]   ;;  %s571_s4 = inlined_call_operand.hbm [shape: f32[1,128], index: 4, kind: output, shape index: {}]  }
   0x1   :  { %10 = vsyncpa [#allocation4], 0  ;;  %s462_s15 = smov [#allocation2]   ;;  %s414_s19 = scalar_lea.hbm %s569_s2, 512 }
   0x2   :  { %s20_s16 = sshll.u32 %s462_s15, 4  ;;  %p415_p0 = scmp.ne.s32.totalorder %s569_s2, %s414_s19  ;;  %s21_s16 = int_to_ptr.vmem [resolvable:$true] %s20_s16 }
   0x3   :  { %p418_p1 = scmp.lt.u32.totalorder %s414_s19, %s569_s2 }
   0x5   :  { %p420_p2 = pnand %p418_p1, %p415_p0 }
   0x7   :  { %423 = shalt.err (!%p420_p2)
}
   0x8   :  { %s424_s24 = scalar_lea.vmem %s21_s16, 512  ;;  %p429_p4 = scmp.lt.s32.totalorder %s21_s16, %s21_s16 }
   0x9   :  { %p425_p3 = scmp.ne.s32.totalorder %s21_s16, %s424_s24  ;;  %p430_p5 = scmp.lt.s32.totalorder %s424_s24, %s424_s24 }
   0xb   :  { %p431_p6 = por %p430_p5, %p429_p4 }
   0xd   :  { %p432_p7 = pnand %p431_p6, %p425_p3 }
   0xf   :  { %435 = shalt.err (!%p432_p7)
}
  0x10   :  { %s463_s25 = smov 128   ;;  %s464_s26 = smov 8  }
  0x11   :  { %26 = dma.hbm_to_vmem [thread:$0]  %s569_s2, 512, %s21_s16, [#allocation3], %s463_s25, %s463_s25, %s464_s26  }
  0x12   :  { %458 = dma.done.wait [#allocation3], 512  }
  0x13   :  { %459 = vsyncadd [#allocation3], 4294966784  ;;  %v465_v0 = vmov 0   ;;  %vm64_vm0 = vcmask 261120   ;;  %v36_v1 = vld [vmem:[%s567_s0] sm:$0xff]  ;;  %v37_v2 = vld [vmem:[%s567_s0 + $0x8] sm:$0xff]  ;;  %v189_v23 = vlaneseq }
  0x14   :  { %380 = vset.pattern.permute.xlu0 %v465_v0  ;;  %381 = vset.pattern.permute.xlu1 %v465_v0  ;;  %v38_v3 = vld [vmem:[%s567_s0 + $0x10] sm:$0xff]  ;;  %v363_v4 = vpack.c.bf16 %v37_v2, %v36_v1  ;;  %v39_v5 = vld [vmem:[%s567_s0 + $0x18] sm:$0xff]  ;;  %v32_v6 = vld [vmem:[#allocation2] sm:$0xff] }
  0x15   :  { %v34_v7 = vld [vmem:[#allocation2 + $0x10] sm:$0xff]  ;;  %v367_v8 = vpack.c.bf16 %v39_v5, %v38_v3  ;;  %357 = vmatprep.mubr.msk.f32.mxu0 %vm64_vm0, %v32_v6  ;;  %v40_v9 = vld [vmem:[%s570_s3] sm:$0xff]  ;;  %v41_v10 = vld [vmem:[%s570_s3 + $0x8] sm:$0xff]  ;;  %v532_v29 = vshrl.u32 %v189_v23, 7 }
  0x16   :  { %360 = vmatprep.mubr.msk.f32.mxu1 %vm64_vm0, %v34_v7  ;;  %364 = vmatprep.subr.bf16.mxu0 %v363_v4  ;;  %v42_v11 = vld [vmem:[%s570_s3 + $0x10] sm:$0xff]  ;;  %v43_v12 = vld [vmem:[%s570_s3 + $0x18] sm:$0x1]  ;;  %v33_v13 = vld [vmem:[#allocation2 + $0x8] sm:$0xff] }
  0x17   :  { %371 = vmatprep.subr.bf16.mxu1 %v363_v4  ;;  %366 = vmatpush3.bf16.msra.mxu0 %v363_v4  ;;  %v35_v14 = vld [vmem:[#allocation2 + $0x18] sm:$0x1]  ;;  %v535_v34 = vsub.s32 0, %v532_v29  ;;  %v544_v46 = vld [vmem:[%s568_s1] sm:$0x7]  ;;  %v222_v48 = vsub.s32 1, %v532_v29 }
  0x18   :  { %373 = vmatpush3.bf16.msra.mxu1 %v363_v4  ;;  %368 = vmatprep.subr.bf16.mxu0 %v367_v8  ;;  %s466_s1 = smov [#allocation5]  }
  0x19   :  { %372 = vmatprep.subr.bf16.mxu1 %v367_v8  ;;  %46 = vperm.xlu0 %380, %v40_v9   ;;  %v216_v51 = vrot.slane %v544_v46, %v535_v34  ;;  %v223_v52 = vrot.slane %v544_v46, %v222_v48  ;;  %s326_s18 = sshll.u32 %s466_s1, 4  ;;  %s327_s18 = int_to_ptr.vmem [resolvable:$true] %s326_s18 }
  0x1a   :  { %51 = vperm.xlu1 %381, %v41_v10   ;;  %s436_s19 = scalar_lea.vmem %s327_s18, 16  ;;  %s440_s20 = scalar_lea.vmem %s327_s18, 32 }
  0x1b   :  { %370 = vmatpush3.bf16.msra.mxu0 %v367_v8  ;;  %p437_p8 = scmp.ne.s32.totalorder %s327_s18, %s436_s19  ;;  %p441_p9 = scmp.lt.s32.totalorder %s327_s18, %s327_s18 }
  0x1c   :  { %374 = vmatpush3.bf16.msra.mxu1 %v367_v8  ;;  %p442_p10 = scmp.lt.s32.totalorder %s440_s20, %s436_s19 }
  0x1d   :  { %56 = vperm.xlu0 %380, %v42_v11  }
  0x1e   :  { %61 = vperm.xlu1 %381, %v43_v12   ;;  %358 = vmatmul.mubr.msk.f32.vlgmr.msra.gmra.mrb[0].mxu0 %vm64_vm0, %v33_v13  ;;  %p443_p11 = por %p442_p10, %p441_p9 }
  0x1f   :  { %361 = vmatmul.mubr.msk.f32.vlgmr.msra.gmra.mrb[0].mxu1 %vm64_vm0, %v35_v14 }
  0x20   :  { %p444_p12 = pnand %p443_p11, %p437_p8 }
  0x98   :  { %v47_v15 = vpop.permute.xlu0 %46 }
  0x99   :  { %v52_v16 = vpop.permute.xlu1 %51 }
  0x9c   :  { %v57_v17 = vpop.permute.xlu0 %56 }
  0x9d   :  { %v62_v0 = vpop.permute.xlu1 %61 }
  0xf1   :  { %v359_v18 = vpop.f32.mrb[0].mxu0 }
  0xf2   :  { %v362_v19 = vpop.f32.mrb[0].mxu1  ;;  %v149_v20 = vadd.f32 %v359_v18, %v52_v16  ;;  %v143_v21 = vpop.f32.mrb[1].mxu0 }
  0xf3   :  { %v153_v22 = vpop.f32.mrb[1].mxu1  ;;  %v144_v24 = vadd.f32 %v143_v21, %v47_v15  ;;  %v159_v8 = vadd.f32 %v362_v19, %v62_v0 }
  0xf4   :  { %v154_v25 = vadd.f32 %v153_v22, %v57_v17  ;;  %v163_v26 = vmul.f32 1.442695, %v149_v20  ;;  %v224_v57 = vsub.f32 %v223_v52, %v149_v20 }
  0xf5   :  { %v180_v27 = vrot.slane %v144_v24, 1  ;;  %v183_v31 = vrot.slane %v144_v24, 2  ;;  %v186_v33 = vrot.slane %v144_v24, 3  ;;  %v217_v53 = vsub.f32 %v216_v51, %v144_v24 }
  0xf6   :  { %v166_v28 = vmul.f32 1.442695, %v154_v25  ;;  %382 = vpow2.f32 %v163_v26  ;;  %v339_v18 = vmul.f32 -1.442695, %v159_v8 }
  0xf7   :  { %v182_v30 = vmax.f32 %v144_v24, %v180_v27 }
  0xf8   :  { %384 = vpow2.f32 %v166_v28 }
  0xf9   :  { %386 = vtanh.f32 %v154_v25  ;;  %v185_v32 = vmax.f32 %v182_v30, %v183_v31 }
  0xfb   :  { %v188_v35 = vmax.f32 %v185_v32, %v186_v33 }
  0xfd   :  { %v192_v36 = vrot.slane %v188_v35, %v535_v34 }
  0xff   :  { %v538_v37 = vsub.f32 %v144_v24, %v192_v36 }
 0x100   :  { %v383_v38 = vpop.eup %382 }
 0x101   :  { %v165_v40 = vadd.f32 1e-06, %v383_v38  ;;  %v194_v41 = vmul.f32 1.442695, %v538_v37 }
 0x102   :  { %v385_v39 = vpop.eup %384 }
 0x103   :  { %v387_v42 = vpop.eup %386  ;;  %v168_v43 = vadd.f32 1e-06, %v385_v39  ;;  %388 = vrcp.f32 %v165_v40 }
 0x104   :  { %v170_v44 = vmul.f32 0.999999, %v387_v42  ;;  %390 = vpow2.f32 %v194_v41 }
 0x105   :  { %v248_v45 = vrot.slane %v168_v43, 4  ;;  %392 = vrcp.f32 %v168_v43 }
 0x106   :  { %v240_v47 = vmul.f32 %v170_v44, %v170_v44  ;;  %v233_v59 = vmul.f32 2.0, %v170_v44  ;;  %v278_v44 = vsub.s32 4, %v532_v29 }
 0x107   :  { %v250_v49 = vmul.f32 %v248_v45, %v165_v40 }
 0x108   :  { %v241_v50 = vsub.f32 1.0, %v240_v47 }
 0x10a   :  { %394 = vrsqrt.f32 %v241_v50  ;;  %v243_v55 = vmul.f32 2.0, %v241_v50  ;;  %vm253_vm1 = vcmp.eq.f32.partialorder %v241_v50, inf  ;;  %v256_v14 = vand.u32 2147483648, %v241_v50 }
 0x10b   :  { %vm255_vm2 = vcmp.eq.f32.partialorder %v241_v50, 0.0 }
 0x10c   :  { %396 = vrcp.f32 %v243_v55 }
 0x10d   :  { %v389_v54 = vpop.eup %388 }
 0x10e   :  { %v391_v56 = vpop.eup %390  ;;  %v219_v58 = vmul.f32 %v389_v54, %v217_v53 }
 0x10f   :  { %v393_v60 = vpop.eup %392  ;;  %v197_v61 = vrot.slane %v391_v56, 1  ;;  %v200_v2 = vrot.slane %v391_v56, 2  ;;  %v203_v7 = vrot.slane %v391_v56, 3 }
 0x110   :  { %v226_v62 = vmul.f32 %v393_v60, %v224_v57  ;;  %v234_v63 = vmul.f32 %v233_v59, %v219_v58  ;;  %v227_v9 = vmul.f32 %v219_v58, %v219_v58 }
 0x111   :  { %v199_v1 = vadd.f32 %v391_v56, %v197_v61 }
 0x112   :  { %v228_v3 = vmul.f32 %v226_v62, %v226_v62  ;;  %v236_v4 = vrot.slane %v226_v62, 4 }
 0x113   :  { %v202_v6 = vadd.f32 %v200_v2, %v199_v1 }
 0x114   :  { %v395_v5 = vpop.eup %394  ;;  %v230_v10 = vrot.slane %v228_v3, 4  ;;  %v238_v11 = vmul.f32 %v236_v4, %v234_v63  ;;  %v307_v63 = vsub.f32 1.0, %v544_v46 }
 0x115   :  { %v252_v12 = vmul.f32 %v395_v5, %v241_v50  ;;  %v205_v13 = vadd.f32 %v203_v7, %v202_v6 }
 0x116   :  { %v232_v15 = vadd.f32 %v230_v10, %v227_v9  ;;  %v397_v23 = vpop.eup %396 }
 0x117   :  { %v254_v16 = vsel %vm253_vm1, %v241_v50, %v252_v12  ;;  %398 = vlog2.f32 %v205_v13 }
 0x118   :  { %v257_v17 = vsel %vm255_vm2, %v256_v14, %v254_v16  ;;  %v239_v20 = vsub.f32 %v232_v15, %v238_v11 }
 0x119   :  { %v258_v21 = vmul.f32 %v257_v17, %v250_v49 }
 0x11a   :  { %v242_v22 = vsub.f32 0.0, %v239_v20 }
 0x11b   :  { %400 = vlog2.f32 %v258_v21 }
 0x11c   :  { %402 = vpow2.f32 %v339_v18  ;;  %v245_v19 = vmul.f32 %v397_v23, %v242_v22 }
 0x11e   :  { %v340_v30 = vadd.f32 -1.837877, %v245_v19 }
 0x121   :  { %v399_v24 = vpop.eup %398 }
 0x122   :  { %v207_v25 = vmul.f32 0.6931472, %v399_v24 }
 0x124   :  { %v211_v27 = vrot.slane %v207_v25, %v535_v34 }
 0x125   :  { %v401_v26 = vpop.eup %400 }
 0x126   :  { %v403_v28 = vpop.eup %402  ;;  %v260_v31 = vmul.f32 0.6931472, %v401_v26  ;;  %v212_v32 = vsub.f32 %v538_v37, %v211_v27 }
 0x127   :  { %v174_v36 = vadd.f32 1.0, %v403_v28 }
 0x128   :  { %v261_v33 = vsub.f32 %v340_v30, %v260_v31  ;;  %v263_v35 = vrot.slane %v212_v32, 4 }
 0x129   :  { %404 = vrcp.f32 %v174_v36 }
 0x12a   :  { %v265_v38 = vadd.f32 %v263_v35, %v261_v33 }
 0x12c   :  { %v267_v39 = vrot.slane %v265_v38, 1  ;;  %v270_v41 = vrot.slane %v265_v38, 2  ;;  %v273_v43 = vrot.slane %v265_v38, 3 }
 0x12e   :  { %v269_v40 = vmax.f32 %v265_v38, %v267_v39 }
 0x130   :  { %v272_v42 = vmax.f32 %v269_v40, %v270_v41 }
 0x132   :  { %v275_v45 = vmax.f32 %v272_v42, %v273_v43 }
 0x133   :  { %v405_v34 = vpop.eup %404 }
 0x134   :  { %v279_v47 = vrot.slane %v275_v45, %v278_v44  ;;  %v177_v50 = vadd.f32 1e-06, %v405_v34 }
 0x136   :  { %v280_v48 = vsub.f32 %v265_v38, %v279_v47  ;;  %v178_v37 = vmul.f32 0.999998, %v177_v50 }
 0x138   :  { %v281_v49 = vmul.f32 1.442695, %v280_v48  ;;  %v308_v51 = vsub.f32 1.0, %v178_v37 }
 0x13a   :  { %406 = vpow2.f32 %v281_v49 }
 0x13b   :  { %408 = vlog2.f32 %v178_v37 }
 0x13c   :  { %410 = vlog2.f32 %v308_v51 }
 0x144   :  { %v407_v52 = vpop.eup %406 }
 0x145   :  { %v284_v53 = vrot.slane %v407_v52, 1  ;;  %v287_v55 = vrot.slane %v407_v52, 2  ;;  %v290_v57 = vrot.slane %v407_v52, 3  ;;  %v409_v59 = vpop.eup %408 }
 0x146   :  { %v411_v29 = vpop.eup %410  ;;  %v298_v60 = vmul.f32 0.6931472, %v409_v59 }
 0x147   :  { %v286_v54 = vadd.f32 %v407_v52, %v284_v53  ;;  %v310_v61 = vmul.f32 0.6931472, %v411_v29 }
 0x148   :  { %v300_v62 = vrot.slane %v298_v60, 6 }
 0x149   :  { %v289_v56 = vadd.f32 %v287_v55, %v286_v54  ;;  %v312_v0 = vrot.slane %v310_v61, 6 }
 0x14a   :  { %v302_v3 = vmul.f32 %v300_v62, %v544_v46 }
 0x14b   :  { %v292_v58 = vadd.f32 %v290_v57, %v289_v56  ;;  %v314_v5 = vmul.f32 %v312_v0, %v307_v63 }
 0x14c   :  { %v304_v7 = vrot.slane %v302_v3, 6 }
 0x14d   :  { %412 = vlog2.f32 %v292_v58  ;;  %v316_v9 = vrot.slane %v314_v5, 6 }
 0x157   :  { %v413_v1 = vpop.eup %412 }
 0x158   :  { %v294_v2 = vmul.f32 0.6931472, %v413_v1 }
 0x15a   :  { %v295_v4 = vadd.f32 %v294_v2, %v275_v45 }
 0x15c   :  { %v296_v6 = vsub.f32 0.0, %v295_v4 }
 0x15e   :  { %v306_v8 = vsub.f32 %v296_v6, %v304_v7 }
 0x160   :  { %v318_v10 = vsub.f32 %v306_v8, %v316_v9 }
 0x162   :  { %319 = vst [vmem:[#allocation5 - $0x4] sm:$0x10] %v318_v10 }
 0x163   :  { %447 = shalt.err (!%p444_p12)
}
 0x164   :  { %s448_s23 = scalar_lea.hbm %s571_s4, 16 }
 0x165   :  { %p449_p13 = scmp.ne.s32.totalorder %s571_s4, %s448_s23  ;;  %p452_p0 = scmp.lt.u32.totalorder %s448_s23, %s571_s4 }
 0x167   :  { %p454_p1 = pnand %p452_p0, %p449_p13 }
 0x169   :  { %457 = shalt.err (!%p454_p1)
}
 0x16a   :  { %329 = dma.vmem_to_hbm [thread:$0]  %s327_s18, 16, %s571_s4, [#allocation4]  }
 0x16b   :  { %460 = dma.done.wait [#allocation4], 16  }
 0x16c   :  { %461 = vsyncadd [#allocation4], 4294967280 }
 0x16d   :  { %333 = vsyncpa [#allocation3], 1 }
 0x16e   :  { %334 = vsyncpa [#allocation4], 1 }

</bundles_post_ra>
